<compile_context>
chip_gen: v5e
topology: v5e:2x2
jax: 0.10.0
libtpu: 0.0.40
codegen_flags: <defaults>
</compile_context>

<pallas_src>
import jax
import jax.numpy as jnp
import numpy as np
from jax.experimental import pallas as pl
from jax.experimental.pallas import tpu as pltpu

LEAKY_SLOPE = 0.01  # nn.LeakyReLU() default negative_slope


# ---------------------------------------------------------------------------
# Kernel
# ---------------------------------------------------------------------------
def make_kernel(in_channels, hidden_dim, hidden_depth, n_flows):
    half = in_channels // 2
    depth = hidden_depth
    depth_eff = max(depth, 1)

    def kernel(x_ref, ans_ref, anb_ref, perm_ref,
               w_in_ref, b_in_ref, w_hid_ref, b_hid_ref, w_out_ref, b_out_ref,
               out_ref):
        # (1, half) mask selecting the last channel of the scale vector.
        last_mask = (jax.lax.broadcasted_iota(jnp.int32, (1, half), 1)
                     == (half - 1))

        def fused_mlp(z, m):
            # Fused s||t BasicFullyConnectedNet: Linear->LeakyReLU (x depth+1)
            # -> Linear.  Weights were packed block-wise so this equals the
            # two separate nets exactly; tanh of the s half is applied by the
            # caller.  Refs are sliced at point of use (cheap .at-style views).
            a = (jnp.dot(z, w_in_ref[m], preferred_element_type=jnp.float32)
                 + b_in_ref[m])
            a = jnp.where(a > 0, a, LEAKY_SLOPE * a)
            for l in range(depth):
                idx = m * depth_eff + l
                a = (jnp.dot(a, w_hid_ref[idx],
                             preferred_element_type=jnp.float32)
                     + b_hid_ref[idx])
                a = jnp.where(a > 0, a, LEAKY_SLOPE * a)
            return (jnp.dot(a, w_out_ref[m],
                            preferred_element_type=jnp.float32)
                    + b_out_ref[m])

        def couple(z_apply, z_keep, m):
            u = fused_mlp(z_apply, m)          # (B, C): [s (padded) | t]
            # s branch: out_dim = half-1, padded with a zero column -> tanh(0)=0,
            # so the sum below is exactly the sum of the real s entries.
            s_b = jnp.tanh(u[:, :half])
            scale = jnp.where(last_mask,
                              -jnp.sum(s_b, axis=1, keepdims=True),
                              s_b)             # get_scale: last = -sum(others)
            return z_keep * jnp.exp(scale) + u[:, half:]

        h = x_ref[...]
        for f in range(n_flows):
            # GINActNorm affine: scale * (h + loc)  (bias pre-folded = scale*loc)
            # TODO(synk): GINActNorm source not provided; standard affine
            # actnorm assumed (parameter-only logdet computed in the wrapper).
            h = ans_ref[f] * h + anb_ref[f]

            # GINDoubleVectorCouplingBlock forward (two alternating couplings)
            x0 = h[:, :half]
            x1 = h[:, half:]
            x1n = couple(x0, x1, 2 * f)        # i = 0: apply on x0, move x1
            x0n = couple(x1n, x0, 2 * f + 1)   # i = 1: halves swapped
            h = jnp.concatenate([x1n, x0n], axis=1)

            # Shuffle: fixed channel permutation as a one-hot matmul (exact f32)
            h = jnp.dot(h, perm_ref[f], preferred_element_type=jnp.float32)

        out_ref[...] = h

    return kernel


# ---------------------------------------------------------------------------
# Parameter construction (PyTorch-faithful "raw" params) and kernel packing
# ---------------------------------------------------------------------------
def _make_net(dims, key):
    layers = []
    for (din, dout) in dims:
        key, k1, k2 = jax.random.split(key, 3)
        bound = 1.0 / np.sqrt(din)
        W = jax.random.uniform(k1, (din, dout), jnp.float32, -bound, bound)
        b = jax.random.uniform(k2, (dout,), jnp.float32, -bound, bound)
        layers.append((W, b))
    return layers, key


def init_raw_params(key, in_channels, hidden_dim, hidden_depth, n_flows):
    half = in_channels // 2
    H = hidden_dim
    s_dims = [(half, H)] + [(H, H)] * hidden_depth + [(H, half - 1)]
    t_dims = [(half, H)] + [(H, H)] * hidden_depth + [(H, half)]
    raw = {"an_loc": [], "an_scale": [], "s": [], "t": [], "perm_idx": []}
    k = key
    for _f in range(n_flows):
        k, kl, ks, kp = jax.random.split(k, 4)
        raw["an_loc"].append(
            0.1 * jax.random.normal(kl, (1, in_channels), jnp.float32))
        raw["an_scale"].append(
            jnp.exp(0.1 * jax.random.normal(ks, (1, in_channels), jnp.float32)))
        raw["perm_idx"].append(np.asarray(jax.random.permutation(kp, in_channels)))
        s_nets, t_nets = [], []
        for _i in range(2):
            net_s, k = _make_net(s_dims, k)
            net_t, k = _make_net(t_dims, k)
            s_nets.append(net_s)
            t_nets.append(net_t)
        raw["s"].append(s_nets)
        raw["t"].append(t_nets)
    return raw


def pack_params(raw, in_channels, hidden_dim, hidden_depth, n_flows):
    """Pack per-flow params into a few stacked contiguous slabs, fusing each
    (s, t) MLP pair into a single MLP with block-structured weights."""
    half = in_channels // 2
    H = hidden_dim
    depth = hidden_depth

    an_scale = jnp.stack(raw["an_scale"])                       # (F,1,C)
    an_bias = jnp.stack([raw["an_scale"][f] * raw["an_loc"][f]
                         for f in range(n_flows)])              # (F,1,C)
    eye = jnp.eye(in_channels, dtype=jnp.float32)
    perm = jnp.stack([eye[np.asarray(raw["perm_idx"][f])].T
                      for f in range(n_flows)])                 # (F,C,C)

    W_in, b_in, W_hid, b_hid, W_out, b_out = [], [], [], [], [], []
    for f in range(n_flows):
        for i in range(2):
            s = raw["s"][f][i]
            t = raw["t"][f][i]
            # input layer: concat on output dim
            W_in.append(jnp.concatenate([s[0][0], t[0][0]], axis=1))
            b_in.append(jnp.concatenate([s[0][1], t[0][1]])[None, :])
            # hidden layers: block-diagonal
            for l in range(depth):
                Wf = jnp.zeros((2 * H, 2 * H), jnp.float32)
                Wf = Wf.at[:H, :H].set(s[1 + l][0]).at[H:, H:].set(t[1 + l][0])
                W_hid.append(Wf)
                b_hid.append(jnp.concatenate([s[1 + l][1], t[1 + l][1]])[None, :])
            if depth == 0:  # dummy (never read by the kernel)
                W_hid.append(jnp.zeros((2 * H, 2 * H), jnp.float32))
                b_hid.append(jnp.zeros((1, 2 * H), jnp.float32))
            # output layer: s branch -> cols [0:half) (last col zero-padded),
            #               t branch -> cols [half:C)
            Wf = jnp.zeros((2 * H, in_channels), jnp.float32)
            Wf = Wf.at[:H, :half - 1].set(s[depth + 1][0])
            Wf = Wf.at[H:, half:].set(t[depth + 1][0])
            W_out.append(Wf)
            bf = jnp.zeros((in_channels,), jnp.float32)
            bf = bf.at[:half - 1].set(s[depth + 1][1]).at[half:].set(t[depth + 1][1])
            b_out.append(bf[None, :])

    return dict(
        an_scale=an_scale, an_bias=an_bias, perm=perm,
        W_in=jnp.stack(W_in), b_in=jnp.stack(b_in),
        W_hid=jnp.stack(W_hid), b_hid=jnp.stack(b_hid),
        W_out=jnp.stack(W_out), b_out=jnp.stack(b_out))


# ---------------------------------------------------------------------------
# Wrapper
# ---------------------------------------------------------------------------
def gin_flow_forward(x4d, packed, in_channels, hidden_dim, hidden_depth,
                     n_flows):
    B = x4d.shape[0]
    assert x4d.shape[1:] == (in_channels, 1, 1)
    x = x4d.reshape(B, in_channels).astype(jnp.float32)

    # Batch-parallel grid axis (keeps both v7x TensorCores busy for large B);
    # for small B this is a single grid step with zero extra overhead.
    bt = 256 if (B % 256 == 0) else B
    grid = (B // bt,)

    kernel = make_kernel(in_channels, hidden_dim, hidden_depth, n_flows)
    param_arrays = [packed[k] for k in ("an_scale", "an_bias", "perm",
                                        "W_in", "b_in", "W_hid", "b_hid",
                                        "W_out", "b_out")]

    def whole(a):  # full array resident in VMEM, same block every grid step
        nd = a.ndim
        return pl.BlockSpec(a.shape, lambda b, _nd=nd: (0,) * _nd)

    out = pl.pallas_call(
        kernel,
        out_shape=jax.ShapeDtypeStruct((B, in_channels), jnp.float32),
        grid=grid,
        in_specs=[pl.BlockSpec((bt, in_channels), lambda b: (b, 0))]
                 + [whole(a) for a in param_arrays],
        out_specs=pl.BlockSpec((bt, in_channels), lambda b: (b, 0)),
        compiler_params=pltpu.CompilerParams(
            dimension_semantics=("parallel",)),
    )(x, *param_arrays)

    # logdet: coupling is volume preserving (zeros), shuffle contributes 0;
    # actnorm (1x1 spatial) is parameter-only -> plain JAX glue.
    # TODO(synk): GINActNorm source not provided; parameter-only logdet of a
    # standard affine actnorm is assumed here.
    logdet_total = jnp.sum(jnp.log(jnp.abs(packed["an_scale"])))
    logdet = jnp.full((B,), logdet_total, jnp.float32)
    return out[:, :, None, None], logdet


# ---------------------------------------------------------------------------
# Pure-JAX reference mirroring the PyTorch forward (unfused weights)
# ---------------------------------------------------------------------------
def _mlp_ref(h, layers, use_tanh):
    n = len(layers)
    for i, (W, b) in enumerate(layers):
        h = jnp.dot(h, W, preferred_element_type=jnp.float32) + b
        if i < n - 1:
            h = jnp.where(h > 0, h, LEAKY_SLOPE * h)
    return jnp.tanh(h) if use_tanh else h


def ref_forward(x4d, raw, in_channels, hidden_dim, hidden_depth, n_flows):
    B = x4d.shape[0]
    half = in_channels // 2
    x = x4d.reshape(B, in_channels).astype(jnp.float32)
    logdet = jnp.zeros((B,), jnp.float32)
    for f in range(n_flows):
        scale, loc = raw["an_scale"][f], raw["an_loc"][f]
        x = scale * (x + loc)
        logdet = logdet + jnp.sum(jnp.log(jnp.abs(scale)))
        for i in range(2):
            if i % 2 != 0:
                x = jnp.concatenate([x[:, half:], x[:, :half]], axis=1)
            xa, xk = x[:, :half], x[:, half:]
            s = _mlp_ref(xa, raw["s"][f][i], use_tanh=True)
            s = jnp.concatenate([s, -jnp.sum(s, axis=1, keepdims=True)], axis=1)
            xk = xk * jnp.exp(s) + _mlp_ref(xa, raw["t"][f][i], use_tanh=False)
            x = jnp.concatenate([xa, xk], axis=1)
        x = x[:, np.asarray(raw["perm_idx"][f])]
    return x[:, :, None, None], logdet


# ---------------------------------------------------------------------------
if __name__ == "__main__":
    B = 8
    in_channels = 16
    hidden_dim = 32
    hidden_depth = 2
    n_flows = 2

    key = jax.random.PRNGKey(0)
    kx, kp = jax.random.split(key)
    x = jax.random.normal(kx, (B, in_channels, 1, 1), jnp.float32)

    raw = init_raw_params(kp, in_channels, hidden_dim, hidden_depth, n_flows)
    packed = pack_params(raw, in_channels, hidden_dim, hidden_depth, n_flows)

    out, logdet = gin_flow_forward(x, packed, in_channels, hidden_dim,
                                   hidden_depth, n_flows)
    out = jax.block_until_ready(out)
    logdet = jax.block_until_ready(logdet)

    ref_out, ref_ld = ref_forward(x, raw, in_channels, hidden_dim,
                                  hidden_depth, n_flows)
    np.testing.assert_allclose(np.asarray(out), np.asarray(ref_out),
                               rtol=5e-5, atol=5e-5)
    np.testing.assert_allclose(np.asarray(logdet), np.asarray(ref_ld),
                               rtol=5e-5, atol=5e-5)
    print("KERNEL_OK")
</pallas_src>

<mosaic_0001>
module attributes {stable_mosaic.version = 11 : i64} {
  func.func @kernel(%arg0: i32, %arg1: memref<8x16xf32, #tpu.memory_space<vmem>>, %arg2: memref<2x1x16xf32, #tpu.memory_space<vmem>>, %arg3: memref<2x1x16xf32, #tpu.memory_space<vmem>>, %arg4: memref<2x16x16xf32, #tpu.memory_space<vmem>>, %arg5: memref<4x8x64xf32, #tpu.memory_space<vmem>>, %arg6: memref<4x1x64xf32, #tpu.memory_space<vmem>>, %arg7: memref<8x64x64xf32, #tpu.memory_space<vmem>>, %arg8: memref<8x1x64xf32, #tpu.memory_space<vmem>>, %arg9: memref<4x64x16xf32, #tpu.memory_space<vmem>>, %arg10: memref<4x1x16xf32, #tpu.memory_space<vmem>>, %arg11: memref<8x16xf32, #tpu.memory_space<vmem>>) attributes {dimension_semantics = [#tpu.dimension_semantics<parallel>], iteration_bounds = array<i64: 1>, scalar_prefetch = 0 : i64, scratch_operands = 0 : i64, tpu.core_type = #tpu.core_type<tc>, window_params = [{transform_indices = @transform_0, window_bounds = array<i64: 8, 16>}, {pipeline_mode = #tpu.pipeline_mode<synchronous>, transform_indices = @transform_1, window_bounds = array<i64: 2, 1, 16>}, {pipeline_mode = #tpu.pipeline_mode<synchronous>, transform_indices = @transform_2, window_bounds = array<i64: 2, 1, 16>}, {pipeline_mode = #tpu.pipeline_mode<synchronous>, transform_indices = @transform_3, window_bounds = array<i64: 2, 16, 16>}, {pipeline_mode = #tpu.pipeline_mode<synchronous>, transform_indices = @transform_4, window_bounds = array<i64: 4, 8, 64>}, {pipeline_mode = #tpu.pipeline_mode<synchronous>, transform_indices = @transform_5, window_bounds = array<i64: 4, 1, 64>}, {pipeline_mode = #tpu.pipeline_mode<synchronous>, transform_indices = @transform_6, window_bounds = array<i64: 8, 64, 64>}, {pipeline_mode = #tpu.pipeline_mode<synchronous>, transform_indices = @transform_7, window_bounds = array<i64: 8, 1, 64>}, {pipeline_mode = #tpu.pipeline_mode<synchronous>, transform_indices = @transform_8, window_bounds = array<i64: 4, 64, 16>}, {pipeline_mode = #tpu.pipeline_mode<synchronous>, transform_indices = @transform_9, window_bounds = array<i64: 4, 1, 16>}, {transform_indices = @transform_10, window_bounds = array<i64: 8, 16>}]} {
    %0 = tpu.iota {dimensions = array<i32: 1>} : vector<1x8xi32>
    %c7_i32 = arith.constant 7 : i32
    %1 = vector.broadcast %c7_i32 : i32 to vector<1x8xi32>
    %2 = arith.cmpi eq, %0, %1 : vector<1x8xi32>
    %c0 = arith.constant 0 : index
    %c0_0 = arith.constant 0 : index
    %3 = vector.load %arg1[%c0, %c0_0] : memref<8x16xf32, #tpu.memory_space<vmem>>, vector<8x16xf32>
    %c0_1 = arith.constant 0 : index
    %c0_2 = arith.constant 0 : index
    %c0_3 = arith.constant 0 : index
    %4 = vector.load %arg2[%c0_1, %c0_2, %c0_3] : memref<2x1x16xf32, #tpu.memory_space<vmem>>, vector<1x1x16xf32>
    %5 = vector.shape_cast %4 : vector<1x1x16xf32> to vector<1x16xf32>
    %6 = vector.broadcast %5 : vector<1x16xf32> to vector<8x16xf32>
    %7 = arith.mulf %6, %3 : vector<8x16xf32>
    %c0_4 = arith.constant 0 : index
    %c0_5 = arith.constant 0 : index
    %c0_6 = arith.constant 0 : index
    %8 = vector.load %arg3[%c0_4, %c0_5, %c0_6] : memref<2x1x16xf32, #tpu.memory_space<vmem>>, vector<1x1x16xf32>
    %9 = vector.shape_cast %8 : vector<1x1x16xf32> to vector<1x16xf32>
    %10 = vector.broadcast %9 : vector<1x16xf32> to vector<8x16xf32>
    %11 = arith.addf %7, %10 : vector<8x16xf32>
    %12 = vector.extract_strided_slice %11 {offsets = [0, 0], sizes = [8, 8], strides = [1, 1]} : vector<8x16xf32> to vector<8x8xf32>
    %13 = vector.extract_strided_slice %11 {offsets = [0, 8], sizes = [8, 8], strides = [1, 1]} : vector<8x16xf32> to vector<8x8xf32>
    %c0_7 = arith.constant 0 : index
    %c0_8 = arith.constant 0 : index
    %c0_9 = arith.constant 0 : index
    %14 = vector.load %arg5[%c0_7, %c0_8, %c0_9] : memref<4x8x64xf32, #tpu.memory_space<vmem>>, vector<1x8x64xf32>
    %15 = vector.shape_cast %14 : vector<1x8x64xf32> to vector<8x64xf32>
    %cst = arith.constant dense<0.000000e+00> : vector<8x64xf32>
    %16 = tpu.matmul %12, %15, %cst {dimension_numbers = #tpu.dot_dimension_numbers<[1], [0], [0], [1], [0, 0, 1, 1], [], []>} : vector<8x8xf32>, vector<8x64xf32>, vector<8x64xf32> -> vector<8x64xf32>
    %c0_10 = arith.constant 0 : index
    %c0_11 = arith.constant 0 : index
    %c0_12 = arith.constant 0 : index
    %17 = vector.load %arg6[%c0_10, %c0_11, %c0_12] : memref<4x1x64xf32, #tpu.memory_space<vmem>>, vector<1x1x64xf32>
    %18 = vector.shape_cast %17 : vector<1x1x64xf32> to vector<1x64xf32>
    %19 = vector.broadcast %18 : vector<1x64xf32> to vector<8x64xf32>
    %20 = arith.addf %16, %19 : vector<8x64xf32>
    %cst_13 = arith.constant 0.000000e+00 : f32
    %21 = vector.broadcast %cst_13 : f32 to vector<8x64xf32>
    %22 = arith.cmpf ogt, %20, %21 : vector<8x64xf32>
    %cst_14 = arith.constant 0.00999999977 : f32
    %23 = vector.broadcast %cst_14 : f32 to vector<8x64xf32>
    %24 = arith.mulf %23, %20 : vector<8x64xf32>
    %25 = arith.select %22, %20, %24 : vector<8x64xi1>, vector<8x64xf32>
    %c0_15 = arith.constant 0 : index
    %c0_16 = arith.constant 0 : index
    %c0_17 = arith.constant 0 : index
    %26 = vector.load %arg7[%c0_15, %c0_16, %c0_17] : memref<8x64x64xf32, #tpu.memory_space<vmem>>, vector<1x64x64xf32>
    %27 = vector.shape_cast %26 : vector<1x64x64xf32> to vector<64x64xf32>
    %cst_18 = arith.constant dense<0.000000e+00> : vector<8x64xf32>
    %28 = tpu.matmul %25, %27, %cst_18 {dimension_numbers = #tpu.dot_dimension_numbers<[1], [0], [0], [1], [0, 0, 1, 1], [], []>} : vector<8x64xf32>, vector<64x64xf32>, vector<8x64xf32> -> vector<8x64xf32>
    %c0_19 = arith.constant 0 : index
    %c0_20 = arith.constant 0 : index
    %c0_21 = arith.constant 0 : index
    %29 = vector.load %arg8[%c0_19, %c0_20, %c0_21] : memref<8x1x64xf32, #tpu.memory_space<vmem>>, vector<1x1x64xf32>
    %30 = vector.shape_cast %29 : vector<1x1x64xf32> to vector<1x64xf32>
    %31 = vector.broadcast %30 : vector<1x64xf32> to vector<8x64xf32>
    %32 = arith.addf %28, %31 : vector<8x64xf32>
    %cst_22 = arith.constant 0.000000e+00 : f32
    %33 = vector.broadcast %cst_22 : f32 to vector<8x64xf32>
    %34 = arith.cmpf ogt, %32, %33 : vector<8x64xf32>
    %cst_23 = arith.constant 0.00999999977 : f32
    %35 = vector.broadcast %cst_23 : f32 to vector<8x64xf32>
    %36 = arith.mulf %35, %32 : vector<8x64xf32>
    %37 = arith.select %34, %32, %36 : vector<8x64xi1>, vector<8x64xf32>
    %c1 = arith.constant 1 : index
    %c0_24 = arith.constant 0 : index
    %c0_25 = arith.constant 0 : index
    %38 = vector.load %arg7[%c1, %c0_24, %c0_25] : memref<8x64x64xf32, #tpu.memory_space<vmem>>, vector<1x64x64xf32>
    %39 = vector.shape_cast %38 : vector<1x64x64xf32> to vector<64x64xf32>
    %cst_26 = arith.constant dense<0.000000e+00> : vector<8x64xf32>
    %40 = tpu.matmul %37, %39, %cst_26 {dimension_numbers = #tpu.dot_dimension_numbers<[1], [0], [0], [1], [0, 0, 1, 1], [], []>} : vector<8x64xf32>, vector<64x64xf32>, vector<8x64xf32> -> vector<8x64xf32>
    %c1_27 = arith.constant 1 : index
    %c0_28 = arith.constant 0 : index
    %c0_29 = arith.constant 0 : index
    %41 = vector.load %arg8[%c1_27, %c0_28, %c0_29] : memref<8x1x64xf32, #tpu.memory_space<vmem>>, vector<1x1x64xf32>
    %42 = vector.shape_cast %41 : vector<1x1x64xf32> to vector<1x64xf32>
    %43 = vector.broadcast %42 : vector<1x64xf32> to vector<8x64xf32>
    %44 = arith.addf %40, %43 : vector<8x64xf32>
    %cst_30 = arith.constant 0.000000e+00 : f32
    %45 = vector.broadcast %cst_30 : f32 to vector<8x64xf32>
    %46 = arith.cmpf ogt, %44, %45 : vector<8x64xf32>
    %cst_31 = arith.constant 0.00999999977 : f32
    %47 = vector.broadcast %cst_31 : f32 to vector<8x64xf32>
    %48 = arith.mulf %47, %44 : vector<8x64xf32>
    %49 = arith.select %46, %44, %48 : vector<8x64xi1>, vector<8x64xf32>
    %c0_32 = arith.constant 0 : index
    %c0_33 = arith.constant 0 : index
    %c0_34 = arith.constant 0 : index
    %50 = vector.load %arg9[%c0_32, %c0_33, %c0_34] : memref<4x64x16xf32, #tpu.memory_space<vmem>>, vector<1x64x16xf32>
    %51 = vector.shape_cast %50 : vector<1x64x16xf32> to vector<64x16xf32>
    %cst_35 = arith.constant dense<0.000000e+00> : vector<8x16xf32>
    %52 = tpu.matmul %49, %51, %cst_35 {dimension_numbers = #tpu.dot_dimension_numbers<[1], [0], [0], [1], [0, 0, 1, 1], [], []>} : vector<8x64xf32>, vector<64x16xf32>, vector<8x16xf32> -> vector<8x16xf32>
    %c0_36 = arith.constant 0 : index
    %c0_37 = arith.constant 0 : index
    %c0_38 = arith.constant 0 : index
    %53 = vector.load %arg10[%c0_36, %c0_37, %c0_38] : memref<4x1x16xf32, #tpu.memory_space<vmem>>, vector<1x1x16xf32>
    %54 = vector.shape_cast %53 : vector<1x1x16xf32> to vector<1x16xf32>
    %55 = vector.broadcast %54 : vector<1x16xf32> to vector<8x16xf32>
    %56 = arith.addf %52, %55 : vector<8x16xf32>
    %57 = vector.extract_strided_slice %56 {offsets = [0, 0], sizes = [8, 8], strides = [1, 1]} : vector<8x16xf32> to vector<8x8xf32>
    %58 = math.tanh %57 : vector<8x8xf32>
    %cst_39 = arith.constant dense<0.000000e+00> : vector<8xf32>
    %59 = vector.multi_reduction <add>, %58, %cst_39 [1] : vector<8x8xf32> to vector<8xf32>
    %60 = vector.shape_cast %59 : vector<8xf32> to vector<8x1xf32>
    %cst_40 = arith.constant 0.000000e+00 : f32
    %61 = vector.broadcast %cst_40 : f32 to vector<8x1xf32>
    %62 = arith.subf %61, %60 : vector<8x1xf32>
    %63 = vector.shape_cast %2 : vector<1x8xi1> to vector<1x8xi1>
    %64 = vector.broadcast %63 : vector<1x8xi1> to vector<8x8xi1>
    %65 = vector.shape_cast %62 : vector<8x1xf32> to vector<8x1xf32>
    %66 = vector.broadcast %65 : vector<8x1xf32> to vector<8x8xf32>
    %67 = arith.select %64, %66, %58 : vector<8x8xi1>, vector<8x8xf32>
    %68 = math.exp %67 : vector<8x8xf32>
    %69 = arith.mulf %13, %68 : vector<8x8xf32>
    %70 = vector.extract_strided_slice %56 {offsets = [0, 8], sizes = [8, 8], strides = [1, 1]} : vector<8x16xf32> to vector<8x8xf32>
    %71 = arith.addf %69, %70 : vector<8x8xf32>
    %c1_41 = arith.constant 1 : index
    %c0_42 = arith.constant 0 : index
    %c0_43 = arith.constant 0 : index
    %72 = vector.load %arg5[%c1_41, %c0_42, %c0_43] : memref<4x8x64xf32, #tpu.memory_space<vmem>>, vector<1x8x64xf32>
    %73 = vector.shape_cast %72 : vector<1x8x64xf32> to vector<8x64xf32>
    %cst_44 = arith.constant dense<0.000000e+00> : vector<8x64xf32>
    %74 = tpu.matmul %71, %73, %cst_44 {dimension_numbers = #tpu.dot_dimension_numbers<[1], [0], [0], [1], [0, 0, 1, 1], [], []>} : vector<8x8xf32>, vector<8x64xf32>, vector<8x64xf32> -> vector<8x64xf32>
    %c1_45 = arith.constant 1 : index
    %c0_46 = arith.constant 0 : index
    %c0_47 = arith.constant 0 : index
    %75 = vector.load %arg6[%c1_45, %c0_46, %c0_47] : memref<4x1x64xf32, #tpu.memory_space<vmem>>, vector<1x1x64xf32>
    %76 = vector.shape_cast %75 : vector<1x1x64xf32> to vector<1x64xf32>
    %77 = vector.broadcast %76 : vector<1x64xf32> to vector<8x64xf32>
    %78 = arith.addf %74, %77 : vector<8x64xf32>
    %cst_48 = arith.constant 0.000000e+00 : f32
    %79 = vector.broadcast %cst_48 : f32 to vector<8x64xf32>
    %80 = arith.cmpf ogt, %78, %79 : vector<8x64xf32>
    %cst_49 = arith.constant 0.00999999977 : f32
    %81 = vector.broadcast %cst_49 : f32 to vector<8x64xf32>
    %82 = arith.mulf %81, %78 : vector<8x64xf32>
    %83 = arith.select %80, %78, %82 : vector<8x64xi1>, vector<8x64xf32>
    %c2 = arith.constant 2 : index
    %c0_50 = arith.constant 0 : index
    %c0_51 = arith.constant 0 : index
    %84 = vector.load %arg7[%c2, %c0_50, %c0_51] : memref<8x64x64xf32, #tpu.memory_space<vmem>>, vector<1x64x64xf32>
    %85 = vector.shape_cast %84 : vector<1x64x64xf32> to vector<64x64xf32>
    %cst_52 = arith.constant dense<0.000000e+00> : vector<8x64xf32>
    %86 = tpu.matmul %83, %85, %cst_52 {dimension_numbers = #tpu.dot_dimension_numbers<[1], [0], [0], [1], [0, 0, 1, 1], [], []>} : vector<8x64xf32>, vector<64x64xf32>, vector<8x64xf32> -> vector<8x64xf32>
    %c2_53 = arith.constant 2 : index
    %c0_54 = arith.constant 0 : index
    %c0_55 = arith.constant 0 : index
    %87 = vector.load %arg8[%c2_53, %c0_54, %c0_55] : memref<8x1x64xf32, #tpu.memory_space<vmem>>, vector<1x1x64xf32>
    %88 = vector.shape_cast %87 : vector<1x1x64xf32> to vector<1x64xf32>
    %89 = vector.broadcast %88 : vector<1x64xf32> to vector<8x64xf32>
    %90 = arith.addf %86, %89 : vector<8x64xf32>
    %cst_56 = arith.constant 0.000000e+00 : f32
    %91 = vector.broadcast %cst_56 : f32 to vector<8x64xf32>
    %92 = arith.cmpf ogt, %90, %91 : vector<8x64xf32>
    %cst_57 = arith.constant 0.00999999977 : f32
    %93 = vector.broadcast %cst_57 : f32 to vector<8x64xf32>
    %94 = arith.mulf %93, %90 : vector<8x64xf32>
    %95 = arith.select %92, %90, %94 : vector<8x64xi1>, vector<8x64xf32>
    %c3 = arith.constant 3 : index
    %c0_58 = arith.constant 0 : index
    %c0_59 = arith.constant 0 : index
    %96 = vector.load %arg7[%c3, %c0_58, %c0_59] : memref<8x64x64xf32, #tpu.memory_space<vmem>>, vector<1x64x64xf32>
    %97 = vector.shape_cast %96 : vector<1x64x64xf32> to vector<64x64xf32>
    %cst_60 = arith.constant dense<0.000000e+00> : vector<8x64xf32>
    %98 = tpu.matmul %95, %97, %cst_60 {dimension_numbers = #tpu.dot_dimension_numbers<[1], [0], [0], [1], [0, 0, 1, 1], [], []>} : vector<8x64xf32>, vector<64x64xf32>, vector<8x64xf32> -> vector<8x64xf32>
    %c3_61 = arith.constant 3 : index
    %c0_62 = arith.constant 0 : index
    %c0_63 = arith.constant 0 : index
    %99 = vector.load %arg8[%c3_61, %c0_62, %c0_63] : memref<8x1x64xf32, #tpu.memory_space<vmem>>, vector<1x1x64xf32>
    %100 = vector.shape_cast %99 : vector<1x1x64xf32> to vector<1x64xf32>
    %101 = vector.broadcast %100 : vector<1x64xf32> to vector<8x64xf32>
    %102 = arith.addf %98, %101 : vector<8x64xf32>
    %cst_64 = arith.constant 0.000000e+00 : f32
    %103 = vector.broadcast %cst_64 : f32 to vector<8x64xf32>
    %104 = arith.cmpf ogt, %102, %103 : vector<8x64xf32>
    %cst_65 = arith.constant 0.00999999977 : f32
    %105 = vector.broadcast %cst_65 : f32 to vector<8x64xf32>
    %106 = arith.mulf %105, %102 : vector<8x64xf32>
    %107 = arith.select %104, %102, %106 : vector<8x64xi1>, vector<8x64xf32>
    %c1_66 = arith.constant 1 : index
    %c0_67 = arith.constant 0 : index
    %c0_68 = arith.constant 0 : index
    %108 = vector.load %arg9[%c1_66, %c0_67, %c0_68] : memref<4x64x16xf32, #tpu.memory_space<vmem>>, vector<1x64x16xf32>
    %109 = vector.shape_cast %108 : vector<1x64x16xf32> to vector<64x16xf32>
    %cst_69 = arith.constant dense<0.000000e+00> : vector<8x16xf32>
    %110 = tpu.matmul %107, %109, %cst_69 {dimension_numbers = #tpu.dot_dimension_numbers<[1], [0], [0], [1], [0, 0, 1, 1], [], []>} : vector<8x64xf32>, vector<64x16xf32>, vector<8x16xf32> -> vector<8x16xf32>
    %c1_70 = arith.constant 1 : index
    %c0_71 = arith.constant 0 : index
    %c0_72 = arith.constant 0 : index
    %111 = vector.load %arg10[%c1_70, %c0_71, %c0_72] : memref<4x1x16xf32, #tpu.memory_space<vmem>>, vector<1x1x16xf32>
    %112 = vector.shape_cast %111 : vector<1x1x16xf32> to vector<1x16xf32>
    %113 = vector.broadcast %112 : vector<1x16xf32> to vector<8x16xf32>
    %114 = arith.addf %110, %113 : vector<8x16xf32>
    %115 = vector.extract_strided_slice %114 {offsets = [0, 0], sizes = [8, 8], strides = [1, 1]} : vector<8x16xf32> to vector<8x8xf32>
    %116 = math.tanh %115 : vector<8x8xf32>
    %cst_73 = arith.constant dense<0.000000e+00> : vector<8xf32>
    %117 = vector.multi_reduction <add>, %116, %cst_73 [1] : vector<8x8xf32> to vector<8xf32>
    %118 = vector.shape_cast %117 : vector<8xf32> to vector<8x1xf32>
    %cst_74 = arith.constant 0.000000e+00 : f32
    %119 = vector.broadcast %cst_74 : f32 to vector<8x1xf32>
    %120 = arith.subf %119, %118 : vector<8x1xf32>
    %121 = vector.shape_cast %2 : vector<1x8xi1> to vector<1x8xi1>
    %122 = vector.broadcast %121 : vector<1x8xi1> to vector<8x8xi1>
    %123 = vector.shape_cast %120 : vector<8x1xf32> to vector<8x1xf32>
    %124 = vector.broadcast %123 : vector<8x1xf32> to vector<8x8xf32>
    %125 = arith.select %122, %124, %116 : vector<8x8xi1>, vector<8x8xf32>
    %126 = math.exp %125 : vector<8x8xf32>
    %127 = arith.mulf %12, %126 : vector<8x8xf32>
    %128 = vector.extract_strided_slice %114 {offsets = [0, 8], sizes = [8, 8], strides = [1, 1]} : vector<8x16xf32> to vector<8x8xf32>
    %129 = arith.addf %127, %128 : vector<8x8xf32>
    %130 = tpu.concatenate %71, %129 in 1 : vector<8x8xf32>, vector<8x8xf32> -> vector<8x16xf32>
    %c0_75 = arith.constant 0 : index
    %c0_76 = arith.constant 0 : index
    %c0_77 = arith.constant 0 : index
    %131 = vector.load %arg4[%c0_75, %c0_76, %c0_77] : memref<2x16x16xf32, #tpu.memory_space<vmem>>, vector<1x16x16xf32>
    %132 = vector.shape_cast %131 : vector<1x16x16xf32> to vector<16x16xf32>
    %cst_78 = arith.constant dense<0.000000e+00> : vector<8x16xf32>
    %133 = tpu.matmul %130, %132, %cst_78 {dimension_numbers = #tpu.dot_dimension_numbers<[1], [0], [0], [1], [0, 0, 1, 1], [], []>} : vector<8x16xf32>, vector<16x16xf32>, vector<8x16xf32> -> vector<8x16xf32>
    %c1_79 = arith.constant 1 : index
    %c0_80 = arith.constant 0 : index
    %c0_81 = arith.constant 0 : index
    %134 = vector.load %arg2[%c1_79, %c0_80, %c0_81] : memref<2x1x16xf32, #tpu.memory_space<vmem>>, vector<1x1x16xf32>
    %135 = vector.shape_cast %134 : vector<1x1x16xf32> to vector<1x16xf32>
    %136 = vector.broadcast %135 : vector<1x16xf32> to vector<8x16xf32>
    %137 = arith.mulf %136, %133 : vector<8x16xf32>
    %c1_82 = arith.constant 1 : index
    %c0_83 = arith.constant 0 : index
    %c0_84 = arith.constant 0 : index
    %138 = vector.load %arg3[%c1_82, %c0_83, %c0_84] : memref<2x1x16xf32, #tpu.memory_space<vmem>>, vector<1x1x16xf32>
    %139 = vector.shape_cast %138 : vector<1x1x16xf32> to vector<1x16xf32>
    %140 = vector.broadcast %139 : vector<1x16xf32> to vector<8x16xf32>
    %141 = arith.addf %137, %140 : vector<8x16xf32>
    %142 = vector.extract_strided_slice %141 {offsets = [0, 0], sizes = [8, 8], strides = [1, 1]} : vector<8x16xf32> to vector<8x8xf32>
    %143 = vector.extract_strided_slice %141 {offsets = [0, 8], sizes = [8, 8], strides = [1, 1]} : vector<8x16xf32> to vector<8x8xf32>
    %c2_85 = arith.constant 2 : index
    %c0_86 = arith.constant 0 : index
    %c0_87 = arith.constant 0 : index
    %144 = vector.load %arg5[%c2_85, %c0_86, %c0_87] : memref<4x8x64xf32, #tpu.memory_space<vmem>>, vector<1x8x64xf32>
    %145 = vector.shape_cast %144 : vector<1x8x64xf32> to vector<8x64xf32>
    %cst_88 = arith.constant dense<0.000000e+00> : vector<8x64xf32>
    %146 = tpu.matmul %142, %145, %cst_88 {dimension_numbers = #tpu.dot_dimension_numbers<[1], [0], [0], [1], [0, 0, 1, 1], [], []>} : vector<8x8xf32>, vector<8x64xf32>, vector<8x64xf32> -> vector<8x64xf32>
    %c2_89 = arith.constant 2 : index
    %c0_90 = arith.constant 0 : index
    %c0_91 = arith.constant 0 : index
    %147 = vector.load %arg6[%c2_89, %c0_90, %c0_91] : memref<4x1x64xf32, #tpu.memory_space<vmem>>, vector<1x1x64xf32>
    %148 = vector.shape_cast %147 : vector<1x1x64xf32> to vector<1x64xf32>
    %149 = vector.broadcast %148 : vector<1x64xf32> to vector<8x64xf32>
    %150 = arith.addf %146, %149 : vector<8x64xf32>
    %cst_92 = arith.constant 0.000000e+00 : f32
    %151 = vector.broadcast %cst_92 : f32 to vector<8x64xf32>
    %152 = arith.cmpf ogt, %150, %151 : vector<8x64xf32>
    %cst_93 = arith.constant 0.00999999977 : f32
    %153 = vector.broadcast %cst_93 : f32 to vector<8x64xf32>
    %154 = arith.mulf %153, %150 : vector<8x64xf32>
    %155 = arith.select %152, %150, %154 : vector<8x64xi1>, vector<8x64xf32>
    %c4 = arith.constant 4 : index
    %c0_94 = arith.constant 0 : index
    %c0_95 = arith.constant 0 : index
    %156 = vector.load %arg7[%c4, %c0_94, %c0_95] : memref<8x64x64xf32, #tpu.memory_space<vmem>>, vector<1x64x64xf32>
    %157 = vector.shape_cast %156 : vector<1x64x64xf32> to vector<64x64xf32>
    %cst_96 = arith.constant dense<0.000000e+00> : vector<8x64xf32>
    %158 = tpu.matmul %155, %157, %cst_96 {dimension_numbers = #tpu.dot_dimension_numbers<[1], [0], [0], [1], [0, 0, 1, 1], [], []>} : vector<8x64xf32>, vector<64x64xf32>, vector<8x64xf32> -> vector<8x64xf32>
    %c4_97 = arith.constant 4 : index
    %c0_98 = arith.constant 0 : index
    %c0_99 = arith.constant 0 : index
    %159 = vector.load %arg8[%c4_97, %c0_98, %c0_99] : memref<8x1x64xf32, #tpu.memory_space<vmem>>, vector<1x1x64xf32>
    %160 = vector.shape_cast %159 : vector<1x1x64xf32> to vector<1x64xf32>
    %161 = vector.broadcast %160 : vector<1x64xf32> to vector<8x64xf32>
    %162 = arith.addf %158, %161 : vector<8x64xf32>
    %cst_100 = arith.constant 0.000000e+00 : f32
    %163 = vector.broadcast %cst_100 : f32 to vector<8x64xf32>
    %164 = arith.cmpf ogt, %162, %163 : vector<8x64xf32>
    %cst_101 = arith.constant 0.00999999977 : f32
    %165 = vector.broadcast %cst_101 : f32 to vector<8x64xf32>
    %166 = arith.mulf %165, %162 : vector<8x64xf32>
    %167 = arith.select %164, %162, %166 : vector<8x64xi1>, vector<8x64xf32>
    %c5 = arith.constant 5 : index
    %c0_102 = arith.constant 0 : index
    %c0_103 = arith.constant 0 : index
    %168 = vector.load %arg7[%c5, %c0_102, %c0_103] : memref<8x64x64xf32, #tpu.memory_space<vmem>>, vector<1x64x64xf32>
    %169 = vector.shape_cast %168 : vector<1x64x64xf32> to vector<64x64xf32>
    %cst_104 = arith.constant dense<0.000000e+00> : vector<8x64xf32>
    %170 = tpu.matmul %167, %169, %cst_104 {dimension_numbers = #tpu.dot_dimension_numbers<[1], [0], [0], [1], [0, 0, 1, 1], [], []>} : vector<8x64xf32>, vector<64x64xf32>, vector<8x64xf32> -> vector<8x64xf32>
    %c5_105 = arith.constant 5 : index
    %c0_106 = arith.constant 0 : index
    %c0_107 = arith.constant 0 : index
    %171 = vector.load %arg8[%c5_105, %c0_106, %c0_107] : memref<8x1x64xf32, #tpu.memory_space<vmem>>, vector<1x1x64xf32>
    %172 = vector.shape_cast %171 : vector<1x1x64xf32> to vector<1x64xf32>
    %173 = vector.broadcast %172 : vector<1x64xf32> to vector<8x64xf32>
    %174 = arith.addf %170, %173 : vector<8x64xf32>
    %cst_108 = arith.constant 0.000000e+00 : f32
    %175 = vector.broadcast %cst_108 : f32 to vector<8x64xf32>
    %176 = arith.cmpf ogt, %174, %175 : vector<8x64xf32>
    %cst_109 = arith.constant 0.00999999977 : f32
    %177 = vector.broadcast %cst_109 : f32 to vector<8x64xf32>
    %178 = arith.mulf %177, %174 : vector<8x64xf32>
    %179 = arith.select %176, %174, %178 : vector<8x64xi1>, vector<8x64xf32>
    %c2_110 = arith.constant 2 : index
    %c0_111 = arith.constant 0 : index
    %c0_112 = arith.constant 0 : index
    %180 = vector.load %arg9[%c2_110, %c0_111, %c0_112] : memref<4x64x16xf32, #tpu.memory_space<vmem>>, vector<1x64x16xf32>
    %181 = vector.shape_cast %180 : vector<1x64x16xf32> to vector<64x16xf32>
    %cst_113 = arith.constant dense<0.000000e+00> : vector<8x16xf32>
    %182 = tpu.matmul %179, %181, %cst_113 {dimension_numbers = #tpu.dot_dimension_numbers<[1], [0], [0], [1], [0, 0, 1, 1], [], []>} : vector<8x64xf32>, vector<64x16xf32>, vector<8x16xf32> -> vector<8x16xf32>
    %c2_114 = arith.constant 2 : index
    %c0_115 = arith.constant 0 : index
    %c0_116 = arith.constant 0 : index
    %183 = vector.load %arg10[%c2_114, %c0_115, %c0_116] : memref<4x1x16xf32, #tpu.memory_space<vmem>>, vector<1x1x16xf32>
    %184 = vector.shape_cast %183 : vector<1x1x16xf32> to vector<1x16xf32>
    %185 = vector.broadcast %184 : vector<1x16xf32> to vector<8x16xf32>
    %186 = arith.addf %182, %185 : vector<8x16xf32>
    %187 = vector.extract_strided_slice %186 {offsets = [0, 0], sizes = [8, 8], strides = [1, 1]} : vector<8x16xf32> to vector<8x8xf32>
    %188 = math.tanh %187 : vector<8x8xf32>
    %cst_117 = arith.constant dense<0.000000e+00> : vector<8xf32>
    %189 = vector.multi_reduction <add>, %188, %cst_117 [1] : vector<8x8xf32> to vector<8xf32>
    %190 = vector.shape_cast %189 : vector<8xf32> to vector<8x1xf32>
    %cst_118 = arith.constant 0.000000e+00 : f32
    %191 = vector.broadcast %cst_118 : f32 to vector<8x1xf32>
    %192 = arith.subf %191, %190 : vector<8x1xf32>
    %193 = vector.shape_cast %2 : vector<1x8xi1> to vector<1x8xi1>
    %194 = vector.broadcast %193 : vector<1x8xi1> to vector<8x8xi1>
    %195 = vector.shape_cast %192 : vector<8x1xf32> to vector<8x1xf32>
    %196 = vector.broadcast %195 : vector<8x1xf32> to vector<8x8xf32>
    %197 = arith.select %194, %196, %188 : vector<8x8xi1>, vector<8x8xf32>
    %198 = math.exp %197 : vector<8x8xf32>
    %199 = arith.mulf %143, %198 : vector<8x8xf32>
    %200 = vector.extract_strided_slice %186 {offsets = [0, 8], sizes = [8, 8], strides = [1, 1]} : vector<8x16xf32> to vector<8x8xf32>
    %201 = arith.addf %199, %200 : vector<8x8xf32>
    %c3_119 = arith.constant 3 : index
    %c0_120 = arith.constant 0 : index
    %c0_121 = arith.constant 0 : index
    %202 = vector.load %arg5[%c3_119, %c0_120, %c0_121] : memref<4x8x64xf32, #tpu.memory_space<vmem>>, vector<1x8x64xf32>
    %203 = vector.shape_cast %202 : vector<1x8x64xf32> to vector<8x64xf32>
    %cst_122 = arith.constant dense<0.000000e+00> : vector<8x64xf32>
    %204 = tpu.matmul %201, %203, %cst_122 {dimension_numbers = #tpu.dot_dimension_numbers<[1], [0], [0], [1], [0, 0, 1, 1], [], []>} : vector<8x8xf32>, vector<8x64xf32>, vector<8x64xf32> -> vector<8x64xf32>
    %c3_123 = arith.constant 3 : index
    %c0_124 = arith.constant 0 : index
    %c0_125 = arith.constant 0 : index
    %205 = vector.load %arg6[%c3_123, %c0_124, %c0_125] : memref<4x1x64xf32, #tpu.memory_space<vmem>>, vector<1x1x64xf32>
    %206 = vector.shape_cast %205 : vector<1x1x64xf32> to vector<1x64xf32>
    %207 = vector.broadcast %206 : vector<1x64xf32> to vector<8x64xf32>
    %208 = arith.addf %204, %207 : vector<8x64xf32>
    %cst_126 = arith.constant 0.000000e+00 : f32
    %209 = vector.broadcast %cst_126 : f32 to vector<8x64xf32>
    %210 = arith.cmpf ogt, %208, %209 : vector<8x64xf32>
    %cst_127 = arith.constant 0.00999999977 : f32
    %211 = vector.broadcast %cst_127 : f32 to vector<8x64xf32>
    %212 = arith.mulf %211, %208 : vector<8x64xf32>
    %213 = arith.select %210, %208, %212 : vector<8x64xi1>, vector<8x64xf32>
    %c6 = arith.constant 6 : index
    %c0_128 = arith.constant 0 : index
    %c0_129 = arith.constant 0 : index
    %214 = vector.load %arg7[%c6, %c0_128, %c0_129] : memref<8x64x64xf32, #tpu.memory_space<vmem>>, vector<1x64x64xf32>
    %215 = vector.shape_cast %214 : vector<1x64x64xf32> to vector<64x64xf32>
    %cst_130 = arith.constant dense<0.000000e+00> : vector<8x64xf32>
    %216 = tpu.matmul %213, %215, %cst_130 {dimension_numbers = #tpu.dot_dimension_numbers<[1], [0], [0], [1], [0, 0, 1, 1], [], []>} : vector<8x64xf32>, vector<64x64xf32>, vector<8x64xf32> -> vector<8x64xf32>
    %c6_131 = arith.constant 6 : index
    %c0_132 = arith.constant 0 : index
    %c0_133 = arith.constant 0 : index
    %217 = vector.load %arg8[%c6_131, %c0_132, %c0_133] : memref<8x1x64xf32, #tpu.memory_space<vmem>>, vector<1x1x64xf32>
    %218 = vector.shape_cast %217 : vector<1x1x64xf32> to vector<1x64xf32>
    %219 = vector.broadcast %218 : vector<1x64xf32> to vector<8x64xf32>
    %220 = arith.addf %216, %219 : vector<8x64xf32>
    %cst_134 = arith.constant 0.000000e+00 : f32
    %221 = vector.broadcast %cst_134 : f32 to vector<8x64xf32>
    %222 = arith.cmpf ogt, %220, %221 : vector<8x64xf32>
    %cst_135 = arith.constant 0.00999999977 : f32
    %223 = vector.broadcast %cst_135 : f32 to vector<8x64xf32>
    %224 = arith.mulf %223, %220 : vector<8x64xf32>
    %225 = arith.select %222, %220, %224 : vector<8x64xi1>, vector<8x64xf32>
    %c7 = arith.constant 7 : index
    %c0_136 = arith.constant 0 : index
    %c0_137 = arith.constant 0 : index
    %226 = vector.load %arg7[%c7, %c0_136, %c0_137] : memref<8x64x64xf32, #tpu.memory_space<vmem>>, vector<1x64x64xf32>
    %227 = vector.shape_cast %226 : vector<1x64x64xf32> to vector<64x64xf32>
    %cst_138 = arith.constant dense<0.000000e+00> : vector<8x64xf32>
    %228 = tpu.matmul %225, %227, %cst_138 {dimension_numbers = #tpu.dot_dimension_numbers<[1], [0], [0], [1], [0, 0, 1, 1], [], []>} : vector<8x64xf32>, vector<64x64xf32>, vector<8x64xf32> -> vector<8x64xf32>
    %c7_139 = arith.constant 7 : index
    %c0_140 = arith.constant 0 : index
    %c0_141 = arith.constant 0 : index
    %229 = vector.load %arg8[%c7_139, %c0_140, %c0_141] : memref<8x1x64xf32, #tpu.memory_space<vmem>>, vector<1x1x64xf32>
    %230 = vector.shape_cast %229 : vector<1x1x64xf32> to vector<1x64xf32>
    %231 = vector.broadcast %230 : vector<1x64xf32> to vector<8x64xf32>
    %232 = arith.addf %228, %231 : vector<8x64xf32>
    %cst_142 = arith.constant 0.000000e+00 : f32
    %233 = vector.broadcast %cst_142 : f32 to vector<8x64xf32>
    %234 = arith.cmpf ogt, %232, %233 : vector<8x64xf32>
    %cst_143 = arith.constant 0.00999999977 : f32
    %235 = vector.broadcast %cst_143 : f32 to vector<8x64xf32>
    %236 = arith.mulf %235, %232 : vector<8x64xf32>
    %237 = arith.select %234, %232, %236 : vector<8x64xi1>, vector<8x64xf32>
    %c3_144 = arith.constant 3 : index
    %c0_145 = arith.constant 0 : index
    %c0_146 = arith.constant 0 : index
    %238 = vector.load %arg9[%c3_144, %c0_145, %c0_146] : memref<4x64x16xf32, #tpu.memory_space<vmem>>, vector<1x64x16xf32>
    %239 = vector.shape_cast %238 : vector<1x64x16xf32> to vector<64x16xf32>
    %cst_147 = arith.constant dense<0.000000e+00> : vector<8x16xf32>
    %240 = tpu.matmul %237, %239, %cst_147 {dimension_numbers = #tpu.dot_dimension_numbers<[1], [0], [0], [1], [0, 0, 1, 1], [], []>} : vector<8x64xf32>, vector<64x16xf32>, vector<8x16xf32> -> vector<8x16xf32>
    %c3_148 = arith.constant 3 : index
    %c0_149 = arith.constant 0 : index
    %c0_150 = arith.constant 0 : index
    %241 = vector.load %arg10[%c3_148, %c0_149, %c0_150] : memref<4x1x16xf32, #tpu.memory_space<vmem>>, vector<1x1x16xf32>
    %242 = vector.shape_cast %241 : vector<1x1x16xf32> to vector<1x16xf32>
    %243 = vector.broadcast %242 : vector<1x16xf32> to vector<8x16xf32>
    %244 = arith.addf %240, %243 : vector<8x16xf32>
    %245 = vector.extract_strided_slice %244 {offsets = [0, 0], sizes = [8, 8], strides = [1, 1]} : vector<8x16xf32> to vector<8x8xf32>
    %246 = math.tanh %245 : vector<8x8xf32>
    %cst_151 = arith.constant dense<0.000000e+00> : vector<8xf32>
    %247 = vector.multi_reduction <add>, %246, %cst_151 [1] : vector<8x8xf32> to vector<8xf32>
    %248 = vector.shape_cast %247 : vector<8xf32> to vector<8x1xf32>
    %cst_152 = arith.constant 0.000000e+00 : f32
    %249 = vector.broadcast %cst_152 : f32 to vector<8x1xf32>
    %250 = arith.subf %249, %248 : vector<8x1xf32>
    %251 = vector.shape_cast %2 : vector<1x8xi1> to vector<1x8xi1>
    %252 = vector.broadcast %251 : vector<1x8xi1> to vector<8x8xi1>
    %253 = vector.shape_cast %250 : vector<8x1xf32> to vector<8x1xf32>
    %254 = vector.broadcast %253 : vector<8x1xf32> to vector<8x8xf32>
    %255 = arith.select %252, %254, %246 : vector<8x8xi1>, vector<8x8xf32>
    %256 = math.exp %255 : vector<8x8xf32>
    %257 = arith.mulf %142, %256 : vector<8x8xf32>
    %258 = vector.extract_strided_slice %244 {offsets = [0, 8], sizes = [8, 8], strides = [1, 1]} : vector<8x16xf32> to vector<8x8xf32>
    %259 = arith.addf %257, %258 : vector<8x8xf32>
    %260 = tpu.concatenate %201, %259 in 1 : vector<8x8xf32>, vector<8x8xf32> -> vector<8x16xf32>
    %c1_153 = arith.constant 1 : index
    %c0_154 = arith.constant 0 : index
    %c0_155 = arith.constant 0 : index
    %261 = vector.load %arg4[%c1_153, %c0_154, %c0_155] : memref<2x16x16xf32, #tpu.memory_space<vmem>>, vector<1x16x16xf32>
    %262 = vector.shape_cast %261 : vector<1x16x16xf32> to vector<16x16xf32>
    %cst_156 = arith.constant dense<0.000000e+00> : vector<8x16xf32>
    %263 = tpu.matmul %260, %262, %cst_156 {dimension_numbers = #tpu.dot_dimension_numbers<[1], [0], [0], [1], [0, 0, 1, 1], [], []>} : vector<8x16xf32>, vector<16x16xf32>, vector<8x16xf32> -> vector<8x16xf32>
    %c0_157 = arith.constant 0 : index
    %c0_158 = arith.constant 0 : index
    %264 = vector.load %arg11[%c0_157, %c0_158] : memref<8x16xf32, #tpu.memory_space<vmem>>, vector<8x16xf32>
    tpu.vector_store %arg11[%c0_157, %c0_158], %263 {strides = array<i32>} : memref<8x16xf32, #tpu.memory_space<vmem>>, vector<8x16xf32>,
    return
  }
  func.func @transform_0(%arg0: i32) -> (i32, i32) {
    %c0_i32 = arith.constant 0 : i32
    %c0_i32_0 = arith.constant 0 : i32
    return %arg0, %c0_i32 : i32, i32
  }
  func.func @transform_1(%arg0: i32) -> (i32, i32, i32) {
    %c0_i32 = arith.constant 0 : i32
    %c0_i32_0 = arith.constant 0 : i32
    %c0_i32_1 = arith.constant 0 : i32
    %c0_i32_2 = arith.constant 0 : i32
    return %c0_i32, %c0_i32_0, %c0_i32_1 : i32, i32, i32
  }
  func.func @transform_2(%arg0: i32) -> (i32, i32, i32) {
    %c0_i32 = arith.constant 0 : i32
    %c0_i32_0 = arith.constant 0 : i32
    %c0_i32_1 = arith.constant 0 : i32
    %c0_i32_2 = arith.constant 0 : i32
    return %c0_i32, %c0_i32_0, %c0_i32_1 : i32, i32, i32
  }
  func.func @transform_3(%arg0: i32) -> (i32, i32, i32) {
    %c0_i32 = arith.constant 0 : i32
    %c0_i32_0 = arith.constant 0 : i32
    %c0_i32_1 = arith.constant 0 : i32
    %c0_i32_2 = arith.constant 0 : i32
    return %c0_i32, %c0_i32_0, %c0_i32_1 : i32, i32, i32
  }
  func.func @transform_4(%arg0: i32) -> (i32, i32, i32) {
    %c0_i32 = arith.constant 0 : i32
    %c0_i32_0 = arith.constant 0 : i32
    %c0_i32_1 = arith.constant 0 : i32
    %c0_i32_2 = arith.constant 0 : i32
    return %c0_i32, %c0_i32_0, %c0_i32_1 : i32, i32, i32
  }
  func.func @transform_5(%arg0: i32) -> (i32, i32, i32) {
    %c0_i32 = arith.constant 0 : i32
    %c0_i32_0 = arith.constant 0 : i32
    %c0_i32_1 = arith.constant 0 : i32
    %c0_i32_2 = arith.constant 0 : i32
    return %c0_i32, %c0_i32_0, %c0_i32_1 : i32, i32, i32
  }
  func.func @transform_6(%arg0: i32) -> (i32, i32, i32) {
    %c0_i32 = arith.constant 0 : i32
    %c0_i32_0 = arith.constant 0 : i32
    %c0_i32_1 = arith.constant 0 : i32
    %c0_i32_2 = arith.constant 0 : i32
    return %c0_i32, %c0_i32_0, %c0_i32_1 : i32, i32, i32
  }
  func.func @transform_7(%arg0: i32) -> (i32, i32, i32) {
    %c0_i32 = arith.constant 0 : i32
    %c0_i32_0 = arith.constant 0 : i32
    %c0_i32_1 = arith.constant 0 : i32
    %c0_i32_2 = arith.constant 0 : i32
    return %c0_i32, %c0_i32_0, %c0_i32_1 : i32, i32, i32
  }
  func.func @transform_8(%arg0: i32) -> (i32, i32, i32) {
    %c0_i32 = arith.constant 0 : i32
    %c0_i32_0 = arith.constant 0 : i32
    %c0_i32_1 = arith.constant 0 : i32
    %c0_i32_2 = arith.constant 0 : i32
    return %c0_i32, %c0_i32_0, %c0_i32_1 : i32, i32, i32
  }
  func.func @transform_9(%arg0: i32) -> (i32, i32, i32) {
    %c0_i32 = arith.constant 0 : i32
    %c0_i32_0 = arith.constant 0 : i32
    %c0_i32_1 = arith.constant 0 : i32
    %c0_i32_2 = arith.constant 0 : i32
    return %c0_i32, %c0_i32_0, %c0_i32_1 : i32, i32, i32
  }
  func.func @transform_10(%arg0: i32) -> (i32, i32) {
    %c0_i32 = arith.constant 0 : i32
    %c0_i32_0 = arith.constant 0 : i32
    return %arg0, %c0_i32 : i32, i32
  }
}

</mosaic_0001>

<bundles_post_ra>
// kernel: tpu_custom_call.1
= control target key start
LH: loop header
LB: loop body
LE: loop exit
PB: predicated region body
PF: predicated region fallthrough
CT: control target
= control target key end

     0   :  { %15 = vsyncpa [#allocation3], 0  ;;  %s1285_s0 = inlined_call_operand.vmem [shape: f32[8,16], index: 0, kind: input, shape index: {}]   ;;  %s1286_s1 = inlined_call_operand.vmem [shape: f32[2,1,16], index: 1, kind: input, shape index: {}]   ;;  %s1287_s2 = inlined_call_operand.vmem [shape: f32[2,1,16], index: 2, kind: input, shape index: {}]   ;;  %s1288_s3 = inlined_call_operand.vmem [shape: f32[2,16,16], index: 3, kind: input, shape index: {}]   ;;  %s1289_s4 = inlined_call_operand.vmem [shape: f32[4,8,64], index: 4, kind: input, shape index: {}]   ;;  %s1290_s5 = inlined_call_operand.vmem [shape: f32[4,1,64], index: 5, kind: input, shape index: {}]   ;;  %s1291_s6 = inlined_call_operand.hbm [shape: f32[8,64,64], index: 6, kind: input, shape index: {}]   ;;  %s1292_s7 = inlined_call_operand.vmem [shape: f32[8,1,64], index: 7, kind: input, shape index: {}]   ;;  %s1293_s8 = inlined_call_operand.vmem [shape: f32[4,64,16], index: 8, kind: input, shape index: {}]   ;;  %s1294_s9 = inlined_call_operand.vmem [shape: f32[4,1,16], index: 9, kind: input, shape index: {}]   ;;  %s1295_s10 = inlined_call_operand.hbm [shape: f32[8,16], index: 10, kind: output, shape index: {}]  }
   0x1   :  { %16 = vsyncpa [#allocation4], 0  ;;  %s33_s15 = sshll.u32 %s1291_s6, 4  ;;  %s973_s16 = smov [#allocation2]   ;;  %s34_s15 = int_to_ptr.hbm [resolvable:$true] %s33_s15 }
   0x2   :  { %s35_s17 = sshll.u32 %s973_s16, 4  ;;  %s974_s18 = smov 128   ;;  %s36_s17 = int_to_ptr.vmem [resolvable:$true] %s35_s17 }
   0x3   :  { %s975_s19 = smov 8  }
   0x4   :  { %41 = dma.hbm_to_vmem [thread:$0]  %s34_s15, 8192, %s36_s17, [#allocation3], %s974_s18, %s974_s18, %s975_s19  }
   0x5   :  { %969 = dma.done.wait [#allocation3], 8192  }
   0x6   :  { %970 = vsyncadd [#allocation3], 4294959104  ;;  %v66_v0 = vld [vmem:[%s1289_s4] sm:$0xff]  ;;  %v105_v4 = vld [vmem:[#allocation2 + $0x38] sm:$0xff]  ;;  %vm71_vm0 = vcmask 64512   ;;  %vm110_vm2 = vcmask 523264   ;;  %v52_v50 = vlaneseq }
   0x7   :  { %v55_v1 = vld [vmem:[%s1285_s0] sm:$0xff]  ;;  %90 = vmatpush.msra.mxu0 %v66_v0  ;;  %v104_v5 = vld [vmem:[#allocation2 + $0x30] sm:$0xff]  ;;  %122 = vmatpush.msra.mxu1 %v105_v4  ;;  %v103_v7 = vld [vmem:[#allocation2 + $0x28] sm:$0xff]  ;;  %s976_s11 = smov 120   ;;  %vm402_vm9 = vcmask 130048   ;;  %s808_s29 = sshll.u32 %s1295_s10, 4  ;;  %s809_s29 = int_to_ptr.hbm [resolvable:$true] %s808_s29 }
   0x8   :  { %v885_v2 = vld [vmem:[%s1286_s1] ss:$0 sm:$0xff]  ;;  %v101_v10 = vld [vmem:[#allocation2 + $0x18] sm:$0xff]  ;;  %v100_v11 = vld [vmem:[#allocation2 + $0x10] sm:$0xff]  ;;  %v1093_v51 = vand.u32 127, %v52_v50 }
   0x9   :  { %v886_v3 = vld [vmem:[%s1287_s2] ss:$0 sm:$0xff]  ;;  %v60_v6 = vmul.f32 %v885_v2, %v55_v1  ;;  %123 = vmatpush.msra.mxu1 %v104_v5  ;;  %v99_v12 = vld [vmem:[#allocation2 + $0x8] sm:$0xff]  ;;  %v145_v14 = vld [vmem:[#allocation2 + $0x78] sm:$0xff] }
   0xa   :  { %v102_v8 = vld [vmem:[#allocation2 + $0x20] sm:$0xff]  ;;  %v144_v15 = vld [vmem:[#allocation2 + $0x70] sm:$0xff]  ;;  %162 = vmatpush.msra.mxu2 %v145_v14  ;;  %v143_v16 = vld [vmem:[#allocation2 + $0x68] sm:$0xff]  ;;  %vm54_vm5 = vcmp.eq.s32.totalorder %v1093_v51, 7 }
   0xb   :  { %v1049_v9 = vadd.f32 %v886_v3, %v60_v6  ;;  %124 = vmatpush.msra.mxu1 %v103_v7  ;;  %v98_v13 = vld [vmem:[#allocation2] sm:$0xff]  ;;  %v141_v18 = vld [vmem:[#allocation2 + $0x58] sm:$0xff]  ;;  %v140_v24 = vld [vmem:[#allocation2 + $0x50] sm:$0xff] }
   0xc   :  { %163 = vmatpush.msra.mxu2 %v144_v15  ;;  %v142_v17 = vld [vmem:[#allocation2 + $0x60] sm:$0xff]  ;;  %v139_v25 = vld [vmem:[#allocation2 + $0x48] sm:$0xff]  ;;  %v184_v27 = vld [vmem:[%s1293_s8 + $0x38] sm:$0xff] }
   0xd   :  { %818 = vmatmul.msk.f32.vlgmr.msra.gmra.mxu0 %vm71_vm0, %v1049_v9  ;;  %125 = vmatpush.msra.mxu1 %v102_v8  ;;  %v887_v19 = vld [vmem:[%s1290_s5] ss:$0 sm:$0xff]  ;;  %v183_v28 = vld [vmem:[%s1293_s8 + $0x30] sm:$0xff]  ;;  %v182_v29 = vld [vmem:[%s1293_s8 + $0x28] sm:$0xff] }
   0xe   :  { %164 = vmatpush.msra.mxu2 %v143_v16  ;;  %v138_v26 = vld [vmem:[#allocation2 + $0x40] sm:$0xff]  ;;  %200 = vmatpush.msra.mxu3 %v184_v27  ;;  %v180_v31 = vld [vmem:[%s1293_s8 + $0x18] sm:$0xff]  ;;  %v179_v37 = vld [vmem:[%s1293_s8 + $0x10] sm:$0xff] }
   0xf   :  { %126 = vmatpush.msra.mxu1 %v101_v10  ;;  %v181_v30 = vld [vmem:[%s1293_s8 + $0x20] sm:$0xff]  ;;  %v178_v38 = vld [vmem:[%s1293_s8 + $0x8] sm:$0xff]  ;;  %v271_v61 = vld [vmem:[#allocation2 + $0xb8] sm:$0xff] }
  0x10   :  { %165 = vmatpush.msra.mxu2 %v142_v17  ;;  %201 = vmatpush.msra.mxu3 %v183_v28  ;;  %v888_v32 = vld [vmem:[%s1292_s7] ss:$0 sm:$0xff]  ;;  %v889_v40 = vld [vmem:[%s1292_s7 + $0x1] ss:$0 sm:$0xff]  ;;  %v823_v57 = vld [vmem:[%s1289_s4 + $0x8] sm:$0xff] }
  0x11   :  { %127 = vmatpush.msra.mxu1 %v100_v11  ;;  %v177_v39 = vld [vmem:[%s1293_s8] sm:$0xff]  ;;  %255 = vmatpush.msrb.mxu0 %v823_v57  ;;  %v270_v62 = vld [vmem:[#allocation2 + $0xb0] sm:$0xff]  ;;  %v269_v63 = vld [vmem:[#allocation2 + $0xa8] sm:$0xff] }
  0x12   :  { %166 = vmatpush.msra.mxu2 %v141_v18  ;;  %202 = vmatpush.msra.mxu3 %v182_v29  ;;  %v890_v45 = vld [vmem:[%s1294_s9] ss:$0 sm:$0xff]  ;;  %v267_v1 = vld [vmem:[#allocation2 + $0x98] sm:$0xff]  ;;  %v266_v3 = vld [vmem:[#allocation2 + $0x90] sm:$0xff] }
  0x13   :  { %128 = vmatpush.msra.mxu1 %v99_v12  ;;  %288 = vmatpush.msra.mxu0 %v271_v61  ;;  %v268_v0 = vld [vmem:[#allocation2 + $0xa0] sm:$0xff]  ;;  %v265_v4 = vld [vmem:[#allocation2 + $0x88] sm:$0xff]  ;;  %v311_v6 = vld [vmem:[#allocation2 + $0xf8] sm:$0xff] }
  0x14   :  { %167 = vmatpush.msra.mxu2 %v140_v24  ;;  %203 = vmatpush.msra.mxu3 %v181_v30  ;;  %v264_v5 = vld [vmem:[#allocation2 + $0x80] sm:$0xff]  ;;  %v310_v7 = vld [vmem:[#allocation2 + $0xf0] sm:$0xff]  ;;  %v309_v8 = vld [vmem:[#allocation2 + $0xe8] sm:$0xff] }
  0x15   :  { %129 = vmatpush.msra.mxu1 %v98_v13  ;;  %289 = vmatpush.msra.mxu0 %v270_v62  ;;  %v308_v10 = vld [vmem:[#allocation2 + $0xe0] sm:$0xff]  ;;  %v307_v11 = vld [vmem:[#allocation2 + $0xd8] sm:$0xff]  ;;  %v306_v17 = vld [vmem:[#allocation2 + $0xd0] sm:$0xff] }
  0x16   :  { %168 = vmatpush.msra.mxu2 %v139_v25  ;;  %204 = vmatpush.msra.mxu3 %v180_v31  ;;  %v891_v12 = vld [vmem:[%s1290_s5 + $0x1] ss:$0 sm:$0xff]  ;;  %v305_v18 = vld [vmem:[#allocation2 + $0xc8] sm:$0xff]  ;;  %v833_v24 = vld [vmem:[%s1293_s8 + $0x58] sm:$0xff] }
  0x17   :  { %290 = vmatpush.msra.mxu0 %v269_v63  ;;  %328 = vmatpush.msrb.mxu1 %v311_v6  ;;  %v892_v25 = vld [vmem:[%s1292_s7 + $0x2] ss:$0 sm:$0xff]  ;;  %v832_v30 = vld [vmem:[%s1293_s8 + $0x50] sm:$0xff]  ;;  %v831_v31 = vld [vmem:[%s1293_s8 + $0x48] sm:$0xff] }
  0x18   :  { %169 = vmatpush.msra.mxu2 %v138_v26  ;;  %205 = vmatpush.msra.mxu3 %v179_v37  ;;  %v479_v57 = vld [vmem:[#allocation2 + $0x138] sm:$0xff]  ;;  %v895_v61 = vld [vmem:[%s1286_s1 + $0x1] ss:$0 sm:$0xff]  ;;  %v518_v6 = vld [vmem:[#allocation2 + $0x170] sm:$0xff] }
  0x19   :  { %291 = vmatpush.msra.mxu0 %v268_v0  ;;  %329 = vmatpush.msrb.mxu1 %v310_v7  ;;  %v896_v62 = vld [vmem:[%s1287_s2 + $0x1] ss:$0 sm:$0xff]  ;;  %v517_v7 = vld [vmem:[#allocation2 + $0x168] sm:$0xff] }
  0x1a   :  { %206 = vmatpush.msra.mxu3 %v178_v38  ;;  %v894_v38 = vld [vmem:[%s1294_s9 + $0x1] ss:$0 sm:$0xff] }
  0x1b   :  { %292 = vmatpush.msra.mxu0 %v267_v1  ;;  %330 = vmatpush.msrb.mxu1 %v309_v8  ;;  %v516_v8 = vld [vmem:[#allocation2 + $0x160] sm:$0xff] }
  0x1c   :  { %207 = vmatpush.msra.mxu3 %v177_v39 }
  0x1d   :  { %293 = vmatpush.msra.mxu0 %v266_v3  ;;  %331 = vmatpush.msrb.mxu1 %v308_v10  ;;  %v473_v3 = vld [vmem:[#allocation2 + $0x108] sm:$0xff]  ;;  %v515_v10 = vld [vmem:[#allocation2 + $0x158] sm:$0xff] }
  0x1f   :  { %294 = vmatpush.msra.mxu0 %v265_v4  ;;  %332 = vmatpush.msrb.mxu1 %v307_v11  ;;  %v472_v4 = vld [vmem:[#allocation2 + $0x100] sm:$0xff] }
  0x20   :  { %v897_v11 = vld [vmem:[%s1290_s5 + $0x2] ss:$0 sm:$0xff] }
  0x21   :  { %295 = vmatpush.msra.mxu0 %v264_v5  ;;  %333 = vmatpush.msrb.mxu1 %v306_v17  ;;  %v519_v5 = vld [vmem:[#allocation2 + $0x178] sm:$0xff]  ;;  %v513_v17 = vld [vmem:[#allocation2 + $0x148] sm:$0xff] }
  0x23   :  { %334 = vmatpush.msrb.mxu1 %v305_v18  ;;  %v512_v18 = vld [vmem:[#allocation2 + $0x140] sm:$0xff] }
  0x8a   :  { %v92_v20 = vpop.f32.mrf.mxu0 }
  0x8b   :  { %v93_v21 = vadd.f32 %v887_v19, %v92_v20  ;;  %v304_v19 = vld [vmem:[#allocation2 + $0xc0] sm:$0xff]  ;;  %v837_v20 = vld [vmem:[%s1293_s8 + $0x78] sm:$0xff] }
  0x8c   :  { %335 = vmatpush.msrb.mxu1 %v304_v19  ;;  %368 = vmatpush.msrb.mxu2 %v837_v20  ;;  %v857_v19 = vld [vmem:[%s1293_s8 + $0xb8] sm:$0xff]  ;;  %v856_v20 = vld [vmem:[%s1293_s8 + $0xb0] sm:$0xff] }
  0x8d   :  { %v96_v22 = vmul.f32 0.01, %v93_v21  ;;  %vm95_vm1 = vcmp.gt.f32.partialorder %v93_v21, 0.0 }
  0x8f   :  { %v97_v23 = vsel %vm95_vm1, %v93_v21, %v96_v22  ;;  %v836_v21 = vld [vmem:[%s1293_s8 + $0x70] sm:$0xff]  ;;  %v835_v22 = vld [vmem:[%s1293_s8 + $0x68] sm:$0xff] }
  0x90   :  { %819 = vmatmul.msk.f32.vlgmr.msra.gmra.mxu1 %vm110_vm2, %v97_v23  ;;  %369 = vmatpush.msrb.mxu2 %v836_v21  ;;  %v834_v23 = vld [vmem:[%s1293_s8 + $0x60] sm:$0xff]  ;;  %v855_v21 = vld [vmem:[%s1293_s8 + $0xa8] sm:$0xff] }
  0x91   :  { %536 = vmatpush.msra.mxu1 %v519_v5 }
  0x92   :  { %370 = vmatpush.msrb.mxu2 %v835_v22  ;;  %v854_v22 = vld [vmem:[%s1293_s8 + $0xa0] sm:$0xff] }
  0x93   :  { %537 = vmatpush.msra.mxu1 %v518_v6 }
  0x94   :  { %371 = vmatpush.msrb.mxu2 %v834_v23  ;;  %v853_v23 = vld [vmem:[%s1293_s8 + $0x98] sm:$0xff] }
  0x95   :  { %538 = vmatpush.msra.mxu1 %v517_v7  ;;  %v680_v7 = vld [vmem:[#allocation2 + $0x1d0] sm:$0xff] }
  0x96   :  { %372 = vmatpush.msrb.mxu2 %v833_v24  ;;  %v898_v24 = vld [vmem:[%s1292_s7 + $0x4] ss:$0 sm:$0xff] }
  0x97   :  { %539 = vmatpush.msra.mxu1 %v516_v8  ;;  %v679_v8 = vld [vmem:[#allocation2 + $0x1c8] sm:$0xff] }
  0x98   :  { %373 = vmatpush.msrb.mxu2 %v832_v30  ;;  %v851_v30 = vld [vmem:[%s1293_s8 + $0x88] sm:$0xff] }
  0x99   :  { %540 = vmatpush.msra.mxu1 %v515_v10  ;;  %v678_v10 = vld [vmem:[#allocation2 + $0x1c0] sm:$0xff] }
  0x9a   :  { %374 = vmatpush.msrb.mxu2 %v831_v31  ;;  %v850_v31 = vld [vmem:[%s1293_s8 + $0x80] sm:$0xff] }
 0x10d   :  { %v131_v33 = vpop.f32.mrf.mxu1 }
 0x10e   :  { %v132_v34 = vadd.f32 %v888_v32, %v131_v33  ;;  %v830_v32 = vld [vmem:[%s1293_s8 + $0x40] sm:$0xff] }
 0x10f   :  { %375 = vmatpush.msrb.mxu2 %v830_v32  ;;  %v893_v33 = vld [vmem:[%s1292_s7 + $0x3] ss:$0 sm:$0xff]  ;;  %v899_v32 = vld [vmem:[%s1292_s7 + $0x5] ss:$0 sm:$0xff] }
 0x110   :  { %v135_v35 = vmul.f32 0.01, %v132_v34  ;;  %vm134_vm3 = vcmp.gt.f32.partialorder %v132_v34, 0.0 }
 0x112   :  { %v136_v36 = vsel %vm134_vm3, %v132_v34, %v135_v35 }
 0x113   :  { %821 = vmatmul.msk.f32.vlgmr.msra.gmra.mxu2 %vm110_vm2, %v136_v36 }
 0x114   :  { %576 = vmatpush.msra.mxu2 %v857_v19 }
 0x116   :  { %577 = vmatpush.msra.mxu2 %v856_v20 }
 0x118   :  { %578 = vmatpush.msra.mxu2 %v855_v21  ;;  %v869_v21 = vld [vmem:[%s1293_s8 + $0xd0] sm:$0xff] }
 0x11a   :  { %579 = vmatpush.msra.mxu2 %v854_v22  ;;  %v868_v22 = vld [vmem:[%s1293_s8 + $0xc8] sm:$0xff] }
 0x11c   :  { %580 = vmatpush.msra.mxu2 %v853_v23  ;;  %v867_v23 = vld [vmem:[%s1293_s8 + $0xc0] sm:$0xff] }
 0x196   :  { %v171_v41 = vpop.f32.mrf.mxu2 }
 0x197   :  { %v172_v42 = vadd.f32 %v889_v40, %v171_v41 }
 0x199   :  { %v175_v43 = vmul.f32 0.01, %v172_v42  ;;  %vm174_vm4 = vcmp.gt.f32.partialorder %v172_v42, 0.0 }
 0x19b   :  { %v176_v44 = vsel %vm174_vm4, %v172_v42, %v175_v43  ;;  %v401_v43 = vld [vmem:[%s1288_s3 + $0x8] sm:$0xff] }
 0x19c   :  { %822 = vmatmul.msk.f32.vlgmr.msra.gmra.mxu3 %vm110_vm2, %v176_v44  ;;  %v400_v44 = vld [vmem:[%s1288_s3] sm:$0xff] }
 0x19d   :  { %420 = vmatpush.msrb.mxu3 %v401_v43 }
 0x19f   :  { %421 = vmatpush.msrb.mxu3 %v400_v44 }
 0x21f   :  { %v209_v46 = vpop.f32.mrf.mxu3 }
 0x220   :  { %v210_v47 = vadd.f32 %v890_v45, %v209_v46 }
 0x222   :  { %905 = vtanh.f32 %v210_v47 }
 0x228   :  { %v906_v48 = vpop.eup %905 }
 0x229   :  { %v213_v49 = vsel %vm71_vm0, %v906_v48, 0.0 }
 0x22a   :  { %214 = vadd.xlane.f32.xlu0 %v213_v49 }
 0x29d   :  { %v215_v52 = vpop.xlane.xlu0 %214 }
 0x29e   :  { %v216_v53 = vsub.f32 0.0, %v215_v52 }
 0x2a0   :  { %v219_v54 = vsel %vm54_vm5, %v216_v53, %v906_v48 }
 0x2a1   :  { %v220_v55 = vmul.f32 1.442695, %v219_v54  ;;  %v843_v54 = vld [vmem:[%s1289_s4 + $0x10] sm:$0xff] }
 0x2a2   :  { %463 = vmatpush.msra.mxu3 %v843_v54  ;;  %v643_v54 = vld [vmem:[#allocation2 + $0x1a8] sm:$0xff] }
 0x2a3   :  { %907 = vpow2.f32 %v220_v55 }
 0x2a9   :  { %v908_v56 = vpop.eup %907 }
 0x2aa   :  { %223 = vrot.lane.b32.xlu0 %v908_v56, %s975_s19 }
 0x31c   :  { %v224_v58 = vpop.permute.xlu0 %223 }
 0x31d   :  { %v226_v59 = vmul.f32 %v224_v58, %v1049_v9  ;;  %v478_v58 = vld [vmem:[#allocation2 + $0x130] sm:$0xff] }
 0x31f   :  { %v227_v60 = vadd.f32 %v226_v59, %v210_v47  ;;  %v476_v59 = vld [vmem:[#allocation2 + $0x120] sm:$0xff] }
 0x321   :  { %236 = vrot.lane.b32.xlu1 %v227_v60, %s976_s11  ;;  %v475_v60 = vld [vmem:[#allocation2 + $0x118] sm:$0xff] }
 0x393   :  { %v1104_v2 = vpop.permute.xlu1 %236 }
 0x394   :  { %825 = vmatmul.msk.f32.vlgmr.msrb.gmra.mxu0 %vm71_vm0, %v1104_v2 }
 0x395   :  { %496 = vmatpush.msrb.mxu0 %v479_v57 }
 0x397   :  { %497 = vmatpush.msrb.mxu0 %v478_v58  ;;  %v640_v58 = vld [vmem:[#allocation2 + $0x190] sm:$0xff] }
 0x411   :  { %v257_v13 = vpop.f32.mrf.mxu0 }
 0x412   :  { %v258_v14 = vadd.f32 %v891_v12, %v257_v13 }
 0x414   :  { %vm260_vm6 = vcmp.gt.f32.partialorder %v258_v14, 0.0  ;;  %v261_v15 = vmul.f32 0.01, %v258_v14 }
 0x416   :  { %v262_v16 = vsel %vm260_vm6, %v258_v14, %v261_v15 }
 0x417   :  { %827 = vmatmul.msk.f32.vlgmr.msra.gmra.mxu0 %vm110_vm2, %v262_v16  ;;  %v514_v16 = vld [vmem:[#allocation2 + $0x150] sm:$0xff] }
 0x418   :  { %541 = vmatpush.msra.mxu1 %v514_v16  ;;  %v902_v16 = vld [vmem:[%s1292_s7 + $0x6] ss:$0 sm:$0xff] }
 0x41a   :  { %542 = vmatpush.msra.mxu1 %v513_v17 }
 0x41c   :  { %543 = vmatpush.msra.mxu1 %v512_v18 }
 0x494   :  { %v297_v26 = vpop.f32.mrf.mxu0 }
 0x495   :  { %v298_v27 = vadd.f32 %v892_v25, %v297_v26 }
 0x497   :  { %vm300_vm7 = vcmp.gt.f32.partialorder %v298_v27, 0.0  ;;  %v301_v28 = vmul.f32 0.01, %v298_v27 }
 0x499   :  { %v302_v29 = vsel %vm300_vm7, %v298_v27, %v301_v28 }
 0x49a   :  { %829 = vmatmul.msk.f32.vlgmr.msrb.gmra.mxu1 %vm110_vm2, %v302_v29  ;;  %v852_v29 = vld [vmem:[%s1293_s8 + $0x90] sm:$0xff] }
 0x49b   :  { %581 = vmatpush.msra.mxu2 %v852_v29  ;;  %v904_v29 = vld [vmem:[%s1294_s9 + $0x3] ss:$0 sm:$0xff] }
 0x49d   :  { %582 = vmatpush.msra.mxu2 %v851_v30 }
 0x49f   :  { %583 = vmatpush.msra.mxu2 %v850_v31 }
 0x517   :  { %v337_v34 = vpop.f32.mrf.mxu1 }
 0x518   :  { %v338_v35 = vadd.f32 %v893_v33, %v337_v34 }
 0x51a   :  { %vm340_vm8 = vcmp.gt.f32.partialorder %v338_v35, 0.0  ;;  %v341_v36 = vmul.f32 0.01, %v338_v35 }
 0x51c   :  { %v342_v37 = vsel %vm340_vm8, %v338_v35, %v341_v36 }
 0x51d   :  { %839 = vmatmul.msk.f32.vlgmr.msrb.gmra.mxu2 %vm110_vm2, %v342_v37  ;;  %v900_v37 = vld [vmem:[%s1294_s9 + $0x2] ss:$0 sm:$0xff] }
 0x5a0   :  { %v377_v39 = vpop.f32.mrf.mxu2 }
 0x5a1   :  { %v378_v40 = vadd.f32 %v894_v38, %v377_v39 }
 0x5a3   :  { %909 = vtanh.f32 %v378_v40  ;;  %390 = vrot.lane.b32.xlu2 %v378_v40, %s976_s11 }
 0x5a9   :  { %v910_v41 = vpop.eup %909 }
 0x5aa   :  { %v381_v42 = vsel %vm71_vm0, %v910_v41, 0.0 }
 0x5ab   :  { %382 = vadd.xlane.f32.xlu1 %v381_v42 }
 0x5fd   :  { %v391_v52 = vpop.permute.xlu2 %390 }
 0x61e   :  { %v383_v45 = vpop.xlane.xlu1 %382 }
 0x61f   :  { %v384_v46 = vsub.f32 0.0, %v383_v45 }
 0x621   :  { %v385_v47 = vsel %vm54_vm5, %v384_v46, %v910_v41 }
 0x622   :  { %v386_v48 = vmul.f32 1.442695, %v385_v47  ;;  %v860_v47 = vld [vmem:[%s1289_s4 + $0x18] sm:$0xff] }
 0x624   :  { %911 = vpow2.f32 %v386_v48 }
 0x62a   :  { %v912_v49 = vpop.eup %911 }
 0x62b   :  { %v388_v50 = vmul.f32 %v912_v49, %v1049_v9  ;;  %v477_v9 = vld [vmem:[#allocation2 + $0x128] sm:$0xff] }
 0x62c   :  { %498 = vmatpush.msrb.mxu0 %v477_v9  ;;  %v639_v9 = vld [vmem:[#allocation2 + $0x188] sm:$0xff] }
 0x62d   :  { %v393_v53 = vadd.f32 %v391_v52, %v388_v50  ;;  %v645_v52 = vld [vmem:[#allocation2 + $0x1b8] sm:$0xff] }
 0x62e   :  { %499 = vmatpush.msrb.mxu0 %v476_v59  ;;  %v638_v59 = vld [vmem:[#allocation2 + $0x180] sm:$0xff] }
 0x62f   :  { %396 = vrot.lane.b32.xlu2 %v393_v53, %s975_s19  ;;  %v644_v53 = vld [vmem:[#allocation2 + $0x1b0] sm:$0xff] }
 0x630   :  { %500 = vmatpush.msrb.mxu0 %v475_v60  ;;  %v685_v60 = vld [vmem:[#allocation2 + $0x1f8] sm:$0xff] }
 0x689   :  { %v397_v55 = vpop.permute.xlu2 %396 }
 0x68a   :  { %v399_v56 = vsel %vm71_vm0, %v1104_v2, %v397_v55  ;;  %v474_v2 = vld [vmem:[#allocation2 + $0x110] sm:$0xff]  ;;  %v642_v55 = vld [vmem:[#allocation2 + $0x1a0] sm:$0xff] }
 0x68b   :  { %840 = vmatmul.msk.f32.vlgmr.msrb.gmra.mxu3 %vm402_vm9, %v399_v56  ;;  %501 = vmatpush.msrb.mxu0 %v474_v2  ;;  %v641_v56 = vld [vmem:[#allocation2 + $0x198] sm:$0xff]  ;;  %v901_v2 = vld [vmem:[%s1290_s5 + $0x3] ss:$0 sm:$0xff] }
 0x68c   :  { %629 = vmatpush.msrb.mxu3 %v860_v47 }
 0x68d   :  { %502 = vmatpush.msrb.mxu0 %v473_v3 }
 0x68f   :  { %503 = vmatpush.msrb.mxu0 %v472_v4 }
 0x691   :  { %702 = vmatpush.msra.mxu0 %v685_v60 }
 0x70e   :  { %v423_v63 = vpop.f32.mrf.mxu3 }
 0x70f   :  { %v431_v0 = vmul.f32 %v895_v61, %v423_v63  ;;  %v684_v61 = vld [vmem:[#allocation2 + $0x1f0] sm:$0xff]  ;;  %v682_v63 = vld [vmem:[#allocation2 + $0x1e0] sm:$0xff] }
 0x710   :  { %703 = vmatpush.msra.mxu0 %v684_v61 }
 0x711   :  { %v1171_v1 = vadd.f32 %v896_v62, %v431_v0  ;;  %v683_v62 = vld [vmem:[#allocation2 + $0x1e8] sm:$0xff]  ;;  %v681_v0 = vld [vmem:[#allocation2 + $0x1d8] sm:$0xff] }
 0x712   :  { %704 = vmatpush.msra.mxu0 %v683_v62 }
 0x713   :  { %845 = vmatmul.msk.f32.vlgmr.msra.gmra.mxu3 %vm71_vm0, %v1171_v1 }
 0x714   :  { %662 = vmatpush.msra.mxu3 %v645_v52  ;;  %705 = vmatpush.msra.mxu0 %v682_v63 }
 0x716   :  { %663 = vmatpush.msra.mxu3 %v644_v53  ;;  %706 = vmatpush.msra.mxu0 %v681_v0 }
 0x718   :  { %664 = vmatpush.msra.mxu3 %v643_v54  ;;  %707 = vmatpush.msra.mxu0 %v680_v7 }
 0x71a   :  { %665 = vmatpush.msra.mxu3 %v642_v55  ;;  %708 = vmatpush.msra.mxu0 %v679_v8 }
 0x71c   :  { %666 = vmatpush.msra.mxu3 %v641_v56  ;;  %709 = vmatpush.msra.mxu0 %v678_v10 }
 0x71e   :  { %667 = vmatpush.msra.mxu3 %v640_v58 }
 0x720   :  { %668 = vmatpush.msra.mxu3 %v639_v9 }
 0x722   :  { %669 = vmatpush.msra.mxu3 %v638_v59 }
 0x796   :  { %v465_v12 = vpop.f32.mrf.mxu3 }
 0x797   :  { %v466_v13 = vadd.f32 %v897_v11, %v465_v12  ;;  %v874_v11 = vld [vmem:[%s1293_s8 + $0xf8] sm:$0xff]  ;;  %v873_v12 = vld [vmem:[%s1293_s8 + $0xf0] sm:$0xff] }
 0x798   :  { %742 = vmatpush.msrb.mxu1 %v874_v11 }
 0x799   :  { %vm468_vm10 = vcmp.gt.f32.partialorder %v466_v13, 0.0  ;;  %v469_v14 = vmul.f32 0.01, %v466_v13 }
 0x79a   :  { %743 = vmatpush.msrb.mxu1 %v873_v12 }
 0x79b   :  { %v470_v15 = vsel %vm468_vm10, %v466_v13, %v469_v14  ;;  %v872_v13 = vld [vmem:[%s1293_s8 + $0xe8] sm:$0xff]  ;;  %v871_v14 = vld [vmem:[%s1293_s8 + $0xe0] sm:$0xff] }
 0x79c   :  { %847 = vmatmul.msk.f32.vlgmr.msrb.gmra.mxu0 %vm110_vm2, %v470_v15  ;;  %744 = vmatpush.msrb.mxu1 %v872_v13  ;;  %v870_v15 = vld [vmem:[%s1293_s8 + $0xd8] sm:$0xff] }
 0x79e   :  { %745 = vmatpush.msrb.mxu1 %v871_v14 }
 0x7a0   :  { %746 = vmatpush.msrb.mxu1 %v870_v15 }
 0x7a2   :  { %747 = vmatpush.msrb.mxu1 %v869_v21 }
 0x7a4   :  { %748 = vmatpush.msrb.mxu1 %v868_v22 }
 0x7a6   :  { %749 = vmatpush.msrb.mxu1 %v867_v23 }
 0x819   :  { %v505_v25 = vpop.f32.mrf.mxu0 }
 0x81a   :  { %v506_v26 = vadd.f32 %v898_v24, %v505_v25  ;;  %v903_v24 = vld [vmem:[%s1292_s7 + $0x7] ss:$0 sm:$0xff] }
 0x81c   :  { %vm508_vm11 = vcmp.gt.f32.partialorder %v506_v26, 0.0  ;;  %v509_v27 = vmul.f32 0.01, %v506_v26 }
 0x81e   :  { %v510_v28 = vsel %vm508_vm11, %v506_v26, %v509_v27 }
 0x81f   :  { %849 = vmatmul.msk.f32.vlgmr.msra.gmra.mxu1 %vm110_vm2, %v510_v28 }
 0x89c   :  { %v545_v33 = vpop.f32.mrf.mxu1 }
 0x89d   :  { %v546_v34 = vadd.f32 %v899_v32, %v545_v33 }
 0x89f   :  { %vm548_vm12 = vcmp.gt.f32.partialorder %v546_v34, 0.0  ;;  %v549_v35 = vmul.f32 0.01, %v546_v34 }
 0x8a1   :  { %v550_v36 = vsel %vm548_vm12, %v546_v34, %v549_v35  ;;  %v878_v34 = vld [vmem:[%s1288_s3 + $0x18] sm:$0xff]  ;;  %v877_v35 = vld [vmem:[%s1288_s3 + $0x10] sm:$0xff]  ;;  %s977_s3 = smov [#allocation5]  }
 0x8a2   :  { %859 = vmatmul.msk.f32.vlgmr.msra.gmra.mxu2 %vm110_vm2, %v550_v36  ;;  %s806_s9 = sshll.u32 %s977_s3, 4  ;;  %s807_s9 = int_to_ptr.vmem [resolvable:$true] %s806_s9 }
 0x8a3   :  { %794 = vmatpush.msrb.mxu2 %v878_v34 }
 0x8a5   :  { %795 = vmatpush.msrb.mxu2 %v877_v35 }
 0x925   :  { %v585_v38 = vpop.f32.mrf.mxu2 }
 0x926   :  { %v586_v39 = vadd.f32 %v900_v37, %v585_v38 }
 0x928   :  { %913 = vtanh.f32 %v586_v39 }
 0x92e   :  { %v914_v40 = vpop.eup %913 }
 0x92f   :  { %v589_v41 = vsel %vm71_vm0, %v914_v40, 0.0 }
 0x930   :  { %590 = vadd.xlane.f32.xlu2 %v589_v41 }
 0x9a3   :  { %v591_v42 = vpop.xlane.xlu2 %590 }
 0x9a4   :  { %v592_v43 = vsub.f32 0.0, %v591_v42 }
 0x9a6   :  { %v593_v44 = vsel %vm54_vm5, %v592_v43, %v914_v40 }
 0x9a7   :  { %v594_v45 = vmul.f32 1.442695, %v593_v44 }
 0x9a9   :  { %915 = vpow2.f32 %v594_v45 }
 0x9af   :  { %v916_v46 = vpop.eup %915 }
 0x9b0   :  { %597 = vrot.lane.b32.xlu0 %v916_v46, %s975_s19 }
 0xa22   :  { %v598_v48 = vpop.permute.xlu0 %597 }
 0xa23   :  { %v600_v49 = vmul.f32 %v598_v48, %v1171_v1 }
 0xa25   :  { %v601_v50 = vadd.f32 %v600_v49, %v586_v39 }
 0xa27   :  { %610 = vrot.lane.b32.xlu0 %v601_v50, %s976_s11 }
 0xa99   :  { %v1223_v57 = vpop.permute.xlu0 %610 }
 0xa9a   :  { %862 = vmatmul.msk.f32.vlgmr.msrb.gmra.mxu3 %vm71_vm0, %v1223_v57 }
 0xb1d   :  { %v631_v3 = vpop.f32.mrf.mxu3 }
 0xb1e   :  { %v632_v4 = vadd.f32 %v901_v2, %v631_v3 }
 0xb20   :  { %vm634_vm13 = vcmp.gt.f32.partialorder %v632_v4, 0.0  ;;  %v635_v5 = vmul.f32 0.01, %v632_v4 }
 0xb22   :  { %v636_v6 = vsel %vm634_vm13, %v632_v4, %v635_v5 }
 0xb23   :  { %864 = vmatmul.msk.f32.vlgmr.msra.gmra.mxu3 %vm110_vm2, %v636_v6 }
 0xba6   :  { %v671_v17 = vpop.f32.mrf.mxu3 }
 0xba7   :  { %v672_v18 = vadd.f32 %v902_v16, %v671_v17 }
 0xba9   :  { %vm674_vm14 = vcmp.gt.f32.partialorder %v672_v18, 0.0  ;;  %v675_v19 = vmul.f32 0.01, %v672_v18 }
 0xbab   :  { %v676_v20 = vsel %vm674_vm14, %v672_v18, %v675_v19 }
 0xbac   :  { %866 = vmatmul.msk.f32.vlgmr.msra.gmra.mxu0 %vm110_vm2, %v676_v20 }
 0xc29   :  { %v711_v25 = vpop.f32.mrf.mxu0 }
 0xc2a   :  { %v712_v26 = vadd.f32 %v903_v24, %v711_v25 }
 0xc2c   :  { %vm714_vm15 = vcmp.gt.f32.partialorder %v712_v26, 0.0  ;;  %v715_v27 = vmul.f32 0.01, %v712_v26 }
 0xc2e   :  { %v716_v28 = vsel %vm714_vm15, %v712_v26, %v715_v27 }
 0xc2f   :  { %876 = vmatmul.msk.f32.vlgmr.msrb.gmra.mxu1 %vm110_vm2, %v716_v28 }
 0xcac   :  { %v751_v30 = vpop.f32.mrf.mxu1 }
 0xcad   :  { %v752_v31 = vadd.f32 %v904_v29, %v751_v30 }
 0xcaf   :  { %917 = vtanh.f32 %v752_v31  ;;  %764 = vrot.lane.b32.xlu1 %v752_v31, %s976_s11 }
 0xcb5   :  { %v918_v32 = vpop.eup %917 }
 0xcb6   :  { %v755_v33 = vsel %vm71_vm0, %v918_v32, 0.0 }
 0xcb7   :  { %756 = vadd.xlane.f32.xlu0 %v755_v33 }
 0xd21   :  { %v765_v42 = vpop.permute.xlu1 %764 }
 0xd2a   :  { %v757_v36 = vpop.xlane.xlu0 %756 }
 0xd2b   :  { %v758_v37 = vsub.f32 0.0, %v757_v36 }
 0xd2d   :  { %v759_v38 = vsel %vm54_vm5, %v758_v37, %v918_v32 }
 0xd2e   :  { %v760_v39 = vmul.f32 1.442695, %v759_v38 }
 0xd30   :  { %919 = vpow2.f32 %v760_v39 }
 0xd36   :  { %v920_v40 = vpop.eup %919 }
 0xd37   :  { %v762_v41 = vmul.f32 %v920_v40, %v1171_v1 }
 0xd39   :  { %v767_v43 = vadd.f32 %v765_v42, %v762_v41 }
 0xd3b   :  { %770 = vrot.lane.b32.xlu2 %v767_v43, %s975_s19 }
 0xd95   :  { %v771_v44 = vpop.permute.xlu2 %770 }
 0xd96   :  { %v773_v45 = vsel %vm71_vm0, %v1223_v57, %v771_v44 }
 0xd97   :  { %879 = vmatmul.msk.f32.vlgmr.msrb.gmra.mxu2 %vm402_vm9, %v773_v45 }
 0xe1a   :  { %v797_v51 = vpop.f32.mrf.mxu2 }
 0xe1b   :  { %800 = vst.msk [vmem:[#allocation5] sm:$0xff] %vm402_vm9, %v797_v51 }
 0xe1c   :  { %811 = dma.vmem_to_hbm [thread:$0]  %s807_s9, 128, %s809_s29, [#allocation4]  }
 0xe1d   :  { %971 = dma.done.wait [#allocation4], 128  }
 0xe1e   :  { %972 = vsyncadd [#allocation4], 4294967168 }
 0xe1f   :  { %816 = vsyncpa [#allocation3], 1 }
 0xe20   :  { %817 = vsyncpa [#allocation4], 1 }

</bundles_post_ra>
